<compile_context>
chip_gen: v5e
topology: v5e:2x2
jax: 0.10.0
libtpu: 0.0.40
codegen_flags: <defaults>
</compile_context>

<pallas_src>
import jax
import jax.numpy as jnp
from jax.experimental import pallas as pl
from jax.experimental.pallas import tpu as pltpu


# ---------------------------------------------------------------------------
# kernel
# ---------------------------------------------------------------------------
def _lerp_kernel(a_ref, b_ref, c_ref, o_ref):
    # a_ref/o_ref: (t0, t1, d2); b_ref: (t1, d2); c_ref: (1, d2)
    a = a_ref[...]
    b = b_ref[...][None, :, :]
    c = c_ref[...][None, :, :]
    # exact torch.lerp formula: a + c * (b - a)  (do NOT refactor; rounding differs)
    o_ref[...] = a + c * (b - a)


# ---------------------------------------------------------------------------
# helpers
# ---------------------------------------------------------------------------
def _round_up(x, m):
    return -(-x // m) * m


def _vmem_capacity_bytes():
    try:
        cap = getattr(pltpu.get_tpu_info(), "vmem_capacity_bytes", None)
        if cap:
            return int(cap)
    except Exception:
        pass
    return 64 << 20  # conservative default: v7x has 64 MiB per TensorCore


# ---------------------------------------------------------------------------
# public wrapper
# ---------------------------------------------------------------------------
def lerp_pallas(a, b, c):
    """torch.lerp(a, b, c) with a:(D0,D1,D2), b:(D1,D2), c:(D2,)."""
    d0, d1, d2 = a.shape
    assert b.shape == (d1, d2)
    assert c.shape == (d2,)

    dtype = a.dtype
    dtype_bytes = jnp.dtype(dtype).itemsize
    # native sublane multiple: f32 -> 8, bf16 -> 16, int8/fp8 -> 32
    sub = max(8, 32 // dtype_bytes)
    d2_pad = _round_up(d2, 128)
    lane_bytes = d2_pad * dtype_bytes

    cap = _vmem_capacity_bytes()
    budget = min(40 << 20, int(cap * 0.6))  # working-set target, well below physical

    row_bytes = _round_up(d1, sub) * lane_bytes  # one padded (D1, D2) slice of `a`
    total_bytes = d0 * row_bytes

    # Tile D1 when a single row is large, or when D0 alone can't provide enough
    # grid steps for pipelining / both v7x TensorCores on a non-tiny problem.
    tile_d1 = row_bytes > (2 << 20) or (d0 < 8 and total_bytes >= (8 << 20))
    if tile_d1:
        target_slab = (2 << 20) if row_bytes > (2 << 20) else (1 << 20)
        t1_max = max(sub, ((target_slab // lane_bytes) // sub) * sub)
        if t1_max >= d1:
            t1, n_j = d1, 1
        else:
            n_j = pl.cdiv(d1, t1_max)
            t1 = min(d1, _round_up(pl.cdiv(d1, n_j), sub))  # balance blocks, keep sublane-aligned
            n_j = pl.cdiv(d1, t1)
    else:
        t1, n_j = d1, 1

    t1_pad = _round_up(t1, sub)
    slab_bytes = t1_pad * lane_bytes          # one padded (t1, D2) slice of `a`
    # Honest resident-broadcast accounting (sublane/lane padding, double-buffered).
    b_bytes = 2 * t1_pad * lane_bytes
    c_bytes = 2 * sub * lane_bytes            # (1, d2) block pads to `sub` rows

    # a + out double-buffered: 4 * t0 * slab_bytes must fit in what's left.
    avail = max(budget - b_bytes - c_bytes, 4 * slab_bytes)
    t0 = max(1, avail // (4 * slab_bytes))
    t0 = min(t0, max(1, (8 << 20) // slab_bytes))       # ~8 MiB per a/out tile is plenty
    # Aim for >= 8 total grid steps (>= 4 per v7x TC) but never shrink tiles
    # below ~1 MiB (keeps per-step overhead negligible on single-TC v5e/v6e).
    min_rows = max(1, pl.cdiv(1 << 20, slab_bytes))
    want_i = max(1, pl.cdiv(8, n_j))
    t0 = min(t0, max(min_rows, pl.cdiv(d0, want_i)))
    t0 = int(max(1, min(t0, d0)))
    n_i = int(pl.cdiv(d0, t0))
    n_j = int(n_j)

    footprint = 4 * t0 * slab_bytes + b_bytes + c_bytes
    vmem_limit = int(min(int(cap * 0.85), max(footprint + (4 << 20), 32 << 20)))

    cost = pl.CostEstimate(
        flops=3 * d0 * d1 * d2,
        transcendentals=0,
        bytes_accessed=(2 * d0 * d1 * d2 + d1 * d2 + d2) * dtype_bytes,
    )

    c2 = c.reshape(1, d2)  # tiny; pads to only sub * d2_pad * dtype_bytes in VMEM

    # Grid: D1 blocks outermost, D0 blocks innermost -> b's block index only
    # changes when j changes, so Pallas DMAs each b block from HBM exactly once.
    return pl.pallas_call(
        _lerp_kernel,
        out_shape=jax.ShapeDtypeStruct((d0, d1, d2), dtype),
        grid_spec=pltpu.PrefetchScalarGridSpec(
            num_scalar_prefetch=0,
            grid=(n_j, n_i),
            in_specs=[
                pl.BlockSpec((t0, t1, d2), lambda j, i: (i, j, 0)),   # a
                pl.BlockSpec((t1, d2), lambda j, i: (j, 0)),          # b (sublane-dense)
                pl.BlockSpec((1, d2), lambda j, i: (0, 0)),           # c (grid-invariant)
            ],
            out_specs=pl.BlockSpec((t0, t1, d2), lambda j, i: (i, j, 0)),
        ),
        compiler_params=pltpu.CompilerParams(
            dimension_semantics=("parallel", "parallel"),
            vmem_limit_bytes=vmem_limit,
        ),
        cost_estimate=cost,
    )(a, b, c2)


if __name__ == "__main__":
    key = jax.random.PRNGKey(0)

    def check(d0, d1, d2):
        k_a, k_b, k_c = jax.random.split(
            jax.random.fold_in(key, d0 * 1000003 + d1 * 1009 + d2), 3)
        a = jax.random.normal(k_a, (d0, d1, d2), dtype=jnp.float32)
        b = jax.random.normal(k_b, (d1, d2), dtype=jnp.float32)
        c = jax.random.uniform(k_c, (d2,), dtype=jnp.float32)
        out = lerp_pallas(a, b, c)
        jax.block_until_ready(out)
        ref = a + c * (b - a)  # torch.lerp semantics
        assert out.shape == (d0, d1, d2)
        assert jnp.allclose(out, ref, atol=1e-6, rtol=1e-6)

    check(2, 8, 128)     # small module-like shape: single block
    check(32, 8, 128)    # multi-row D0 block, full (D1, D2) kept per block
    check(2, 768, 768)   # D1-tiled path (row > 2 MiB), b DMA'd once per D1 block

    print("KERNEL_OK")
</pallas_src>

<mosaic_0001>
module attributes {stable_mosaic.version = 11 : i64} {
  func.func @_lerp_kernel(%arg0: i32, %arg1: i32, %arg2: memref<2x8x128xf32, #tpu.memory_space<vmem>>, %arg3: memref<8x128xf32, #tpu.memory_space<vmem>>, %arg4: memref<1x128xf32, #tpu.memory_space<vmem>>, %arg5: memref<2x8x128xf32, #tpu.memory_space<vmem>>) attributes {dimension_semantics = [#tpu.dimension_semantics<parallel>, #tpu.dimension_semantics<parallel>], iteration_bounds = array<i64: 1, 1>, scalar_prefetch = 0 : i64, scratch_operands = 0 : i64, tpu.core_type = #tpu.core_type<tc>, window_params = [{transform_indices = @transform_0, window_bounds = array<i64: 2, 8, 128>}, {transform_indices = @transform_1, window_bounds = array<i64: 8, 128>}, {pipeline_mode = #tpu.pipeline_mode<synchronous>, transform_indices = @transform_2, window_bounds = array<i64: 1, 128>}, {transform_indices = @transform_3, window_bounds = array<i64: 2, 8, 128>}]} {
    %c0 = arith.constant 0 : index
    %c0_0 = arith.constant 0 : index
    %c0_1 = arith.constant 0 : index
    %0 = vector.load %arg2[%c0, %c0_0, %c0_1] : memref<2x8x128xf32, #tpu.memory_space<vmem>>, vector<2x8x128xf32>
    %c0_2 = arith.constant 0 : index
    %c0_3 = arith.constant 0 : index
    %1 = vector.load %arg3[%c0_2, %c0_3] : memref<8x128xf32, #tpu.memory_space<vmem>>, vector<8x128xf32>
    %2 = vector.shape_cast %1 : vector<8x128xf32> to vector<1x8x128xf32>
    %c0_4 = arith.constant 0 : index
    %c0_5 = arith.constant 0 : index
    %3 = vector.load %arg4[%c0_4, %c0_5] : memref<1x128xf32, #tpu.memory_space<vmem>>, vector<1x128xf32>
    %4 = vector.shape_cast %3 : vector<1x128xf32> to vector<1x1x128xf32>
    %5 = vector.broadcast %2 : vector<1x8x128xf32> to vector<2x8x128xf32>
    %6 = arith.subf %5, %0 : vector<2x8x128xf32>
    %7 = vector.broadcast %4 : vector<1x1x128xf32> to vector<2x8x128xf32>
    %8 = arith.mulf %7, %6 : vector<2x8x128xf32>
    %9 = arith.addf %0, %8 : vector<2x8x128xf32>
    %c0_6 = arith.constant 0 : index
    %c0_7 = arith.constant 0 : index
    %c0_8 = arith.constant 0 : index
    %10 = vector.load %arg5[%c0_6, %c0_7, %c0_8] : memref<2x8x128xf32, #tpu.memory_space<vmem>>, vector<2x8x128xf32>
    tpu.vector_store %arg5[%c0_6, %c0_7, %c0_8], %9 {strides = array<i32>} : memref<2x8x128xf32, #tpu.memory_space<vmem>>, vector<2x8x128xf32>,
    return
  }
  func.func @transform_0(%arg0: i32, %arg1: i32) -> (i32, i32, i32) {
    %c0_i32 = arith.constant 0 : i32
    %c0_i32_0 = arith.constant 0 : i32
    return %arg1, %arg0, %c0_i32 : i32, i32, i32
  }
  func.func @transform_1(%arg0: i32, %arg1: i32) -> (i32, i32) {
    %c0_i32 = arith.constant 0 : i32
    %c0_i32_0 = arith.constant 0 : i32
    return %arg0, %c0_i32 : i32, i32
  }
  func.func @transform_2(%arg0: i32, %arg1: i32) -> (i32, i32) {
    %c0_i32 = arith.constant 0 : i32
    %c0_i32_0 = arith.constant 0 : i32
    %c0_i32_1 = arith.constant 0 : i32
    return %c0_i32, %c0_i32_0 : i32, i32
  }
  func.func @transform_3(%arg0: i32, %arg1: i32) -> (i32, i32, i32) {
    %c0_i32 = arith.constant 0 : i32
    %c0_i32_0 = arith.constant 0 : i32
    return %arg1, %arg0, %c0_i32 : i32, i32, i32
  }
}

</mosaic_0001>

<bundles_post_ra>
// kernel: tpu_custom_call.1
= control target key start
LH: loop header
LB: loop body
LE: loop exit
PB: predicated region body
PF: predicated region fallthrough
CT: control target
= control target key end

     0   :  { %8 = vsyncpa [#allocation3], 0  ;;  %s207_s0 = inlined_call_operand.hbm [shape: f32[2,8,128], index: 0, kind: input, shape index: {}]   ;;  %s208_s1 = inlined_call_operand.hbm [shape: f32[8,128], index: 1, kind: input, shape index: {}]   ;;  %s209_s2 = inlined_call_operand.vmem [shape: f32[1,128], index: 2, kind: input, shape index: {}]   ;;  %s210_s3 = inlined_call_operand.hbm [shape: f32[2,8,128], index: 3, kind: output, shape index: {}]  }
   0x1   :  { %9 = vsyncpa [#allocation6], 0 }
   0x2   :  { %10 = vsyncpa [#allocation4], 0  ;;  %s15_s14 = sshll.u32 %s207_s0, 4  ;;  %s164_s15 = smov [#allocation2]   ;;  %s16_s14 = int_to_ptr.hbm [resolvable:$true] %s15_s14 }
   0x3   :  { %s17_s16 = sshll.u32 %s164_s15, 4  ;;  %s29_s19 = sshll.u32 %s208_s1, 4  ;;  %s18_s16 = int_to_ptr.vmem [resolvable:$true] %s17_s16  ;;  %s30_s19 = int_to_ptr.hbm [resolvable:$true] %s29_s19 }
   0x4   :  { %s165_s20 = smov 128   ;;  %s166_s21 = smov 8  }
   0x5   :  { %23 = dma.hbm_to_vmem [thread:$0]  %s16_s14, 256, %s18_s16, [#allocation3], %s165_s20, %s165_s20, %s166_s21  }
   0x6   :  { %s167_s22 = smov [#allocation5]  }
   0x7   :  { %s31_s23 = sshll.u32 %s167_s22, 4  ;;  %s32_s23 = int_to_ptr.vmem [resolvable:$true] %s31_s23 }
   0x8   :  { %34 = dma.hbm_to_vmem [thread:$0]  %s30_s19, 128, %s32_s23, [#allocation6]  }
   0x9   :  { %158 = dma.done.wait [#allocation3], 256  }
   0xa   :  { %159 = vsyncadd [#allocation3], 4294967040 }
   0xb   :  { %160 = dma.done.wait [#allocation6], 128  }
   0xc   :  { %161 = vsyncadd [#allocation6], 4294967168  ;;  %v45_v0 = vld [vmem:[#allocation2] sm:$0xff]  ;;  %v47_v1 = vld [vmem:[#allocation5] sm:$0xff]  ;;  %s168_s24 = smov [#allocation7]   ;;  %s66_s28 = sshll.u32 %s210_s3, 4  ;;  %s67_s28 = int_to_ptr.hbm [resolvable:$true] %s66_s28 }
   0xd   :  { %v49_v2 = vsub.f32 %v47_v1, %v45_v0  ;;  %v85_v3 = vld [vmem:[%s209_s2] ss:$0 sm:$0xff]  ;;  %v46_v4 = vld [vmem:[#allocation2 + $0x8] sm:$0xff]  ;;  %s64_s25 = sshll.u32 %s168_s24, 4  ;;  %s65_s25 = int_to_ptr.vmem [resolvable:$true] %s64_s25 }
   0xe   :  { %v50_v5 = vsub.f32 %v47_v1, %v46_v4 }
   0xf   :  { %v54_v6 = vmul.f32 %v85_v3, %v49_v2 }
  0x10   :  { %v55_v7 = vmul.f32 %v85_v3, %v50_v5 }
  0x11   :  { %v56_v8 = vadd.f32 %v54_v6, %v45_v0 }
  0x12   :  { %v57_v9 = vadd.f32 %v55_v7, %v46_v4 }
  0x13   :  { %58 = vst [vmem:[#allocation7] sm:$0xff] %v56_v8 }
  0x14   :  { %59 = vst [vmem:[#allocation7 + $0x8] sm:$0xff] %v57_v9 }
  0x15   :  { %72 = dma.vmem_to_hbm [thread:$0]  %s65_s25, 256, %s67_s28, [#allocation4], %s165_s20, %s165_s20, %s166_s21  }
  0x16   :  { %162 = dma.done.wait [#allocation4], 256  }
  0x17   :  { %163 = vsyncadd [#allocation4], 4294967040 }
  0x18   :  { %77 = vsyncpa [#allocation3], 1 }
  0x19   :  { %78 = vsyncpa [#allocation6], 1 }
  0x1a   :  { %79 = vsyncpa [#allocation4], 1 }

</bundles_post_ra>
